<compile_context>
chip_gen: v6e
topology: v6e:2x2x1
jax: 0.10.0
libtpu: 0.0.40
codegen_flags: <defaults>
</compile_context>

<pallas_src>
import functools

import jax
import jax.numpy as jnp
from jax.experimental import pallas as pl
from jax.experimental.pallas import tpu as pltpu


def _mlp_kernel(x_ref, w0_ref, b0_ref, w1_ref, b1_ref, w2_ref, b2_ref, o_ref):
    # One batch tile, batch on lanes: x_ref is (D_in, bt); weights are torch
    # [out, in]; biases are (out, 1) f32 and broadcast over the lane (batch)
    # axis. MXU matmuls accumulate in f32; bias-add / tanh stay in f32.
    x = x_ref[...]

    h0 = jnp.dot(w0_ref[...], x, preferred_element_type=jnp.float32) + b0_ref[...]
    h0 = jnp.tanh(h0).astype(w1_ref.dtype)   # back to compute dtype for the MXU

    h1 = jnp.dot(w1_ref[...], h0, preferred_element_type=jnp.float32) + b1_ref[...]
    h1 = jnp.tanh(h1).astype(w2_ref.dtype)

    out = jnp.dot(w2_ref[...], h1, preferred_element_type=jnp.float32) + b2_ref[...]
    o_ref[...] = out.astype(o_ref.dtype)     # (D_out, bt) lane-dense store


def _round_up(x, m):
    return ((x + m - 1) // m) * m


def _pick_batch_tile(B, batch_tile):
    """Pick the lane-axis (batch) tile.

    - Tiny batches: one whole-array block (no 128-multiple requirement, no
      per-step pipeline overhead).
    - Otherwise: 128-aligned blocks, at least two of them so the 'parallel'
      grid axis can shard across v7x's two TensorCores.
    """
    if B <= 256:
        return B
    return min(batch_tile, _round_up((B + 1) // 2, 128))


@functools.partial(jax.jit, static_argnames=("batch_tile", "use_bf16"))
def gaussian_mlp_forward(x, w0, b0, w1, b1, w2, b2, *, batch_tile=4096, use_bf16=True):
    """Forward pass of GaussianMLP.

    x:  (B, 18) float32 (torch layout).
    wl: (out_features, in_features) -- native torch nn.Linear weight layout.
    bl: (out_features,) float32.
    Returns (B, 4) float32.
    """
    B, D_in = x.shape
    H0, H1, D_out = w0.shape[0], w1.shape[0], w2.shape[0]
    assert w0.shape == (H0, D_in) and w1.shape == (H1, H0) and w2.shape == (D_out, H1)
    assert batch_tile % 128 == 0, "batch_tile must be a multiple of 128 (lane tiling)"

    compute_dtype = jnp.bfloat16 if use_bf16 else jnp.float32

    # Batch-on-lanes: transpose x once in the wrapper, fusing the bf16 cast
    # into that transpose (one XLA op; no standalone cast pass over x in HBM).
    x_t = x.T.astype(compute_dtype)                     # (D_in, B)
    w0q = w0.astype(compute_dtype)                      # (64, 18)
    w1q = w1.astype(compute_dtype)                      # (64, 64)
    w2q = w2.astype(compute_dtype)                      # (4, 64)
    b0c = b0.reshape(H0, 1).astype(jnp.float32)
    b1c = b1.reshape(H1, 1).astype(jnp.float32)
    b2c = b2.reshape(D_out, 1).astype(jnp.float32)

    bt = _pick_batch_tile(B, batch_tile)
    grid = (pl.cdiv(B, bt),)

    # Rough per-step VMEM need: double-buffered x/out tiles + f32 intermediates
    # (two (64, bt) activations) + weights + slack. Clamped to [16, 48] MiB:
    # enough that user-raised tiles still compile on v5e (16 MiB default scoped
    # limit) while staying under v7x's 64 MiB physical VMEM.
    itemsize_x = 2 if use_bf16 else 4
    vmem_est = (2 * D_in * bt * itemsize_x              # x tile, double-buffered
                + 2 * D_out * bt * 4                    # out tile, double-buffered
                + 4 * max(H0, H1) * bt * 4              # f32 intermediates
                + (1 << 20))                            # weights + headroom
    vmem_limit = int(min(max(vmem_est, 16 << 20), 48 << 20))

    cost = pl.CostEstimate(
        flops=2 * B * (D_in * H0 + H0 * H1 + H1 * D_out),
        transcendentals=B * (H0 + H1),
        bytes_accessed=(D_in * B * itemsize_x + D_out * B * 4
                        + (w0q.size + w1q.size + w2q.size) * itemsize_x
                        + (b0c.size + b1c.size + b2c.size) * 4),
    )

    out_t = pl.pallas_call(
        _mlp_kernel,
        out_shape=jax.ShapeDtypeStruct((D_out, B), jnp.float32),
        grid_spec=pltpu.PrefetchScalarGridSpec(
            num_scalar_prefetch=0,
            grid=grid,
            in_specs=[
                pl.BlockSpec((D_in, bt), lambda i: (0, i)),   # x tile, lane-dense
                pl.BlockSpec(w0q.shape, lambda i: (0, 0)),    # W0 (64,18), VMEM-resident
                pl.BlockSpec(b0c.shape, lambda i: (0, 0)),    # b0 (64,1)
                pl.BlockSpec(w1q.shape, lambda i: (0, 0)),    # W1 (64,64)
                pl.BlockSpec(b1c.shape, lambda i: (0, 0)),    # b1 (64,1)
                pl.BlockSpec(w2q.shape, lambda i: (0, 0)),    # W2 (4,64)
                pl.BlockSpec(b2c.shape, lambda i: (0, 0)),    # b2 (4,1)
            ],
            out_specs=pl.BlockSpec((D_out, bt), lambda i: (0, i)),
        ),
        compiler_params=pltpu.CompilerParams(
            # Batch tiles are independent -> shardable across TensorCores
            # (grid is forced to >= 2 steps for mid/large B so v7x uses both TCs).
            dimension_semantics=("parallel",),
            vmem_limit_bytes=vmem_limit,
        ),
        cost_estimate=cost,
    )(x_t, w0q, b0c, w1q, b1c, w2q, b2c)

    # TODO(synk): emit bf16 output instead of f32 if downstream tolerates it
    # (halves output writeback).
    return out_t.T                                       # back to (B, D_out)


def init_params(key):
    """Deterministic init mimicking torch.nn.Linear default (uniform +/- 1/sqrt(fan_in)).

    Weights are kept in the native torch [out_features, in_features] layout."""
    dims = [(18, 64), (64, 64), (64, 4)]
    params = []
    for fan_in, fan_out in dims:
        key, kw, kb = jax.random.split(key, 3)
        bound = 1.0 / jnp.sqrt(fan_in)
        w = jax.random.uniform(kw, (fan_out, fan_in), jnp.float32, -bound, bound)
        b = jax.random.uniform(kb, (fan_out,), jnp.float32, -bound, bound)
        params += [w, b]
    return params


def reference_forward(x, w0, b0, w1, b1, w2, b2):
    h0 = jnp.tanh(x @ w0.T + b0)
    h1 = jnp.tanh(h0 @ w1.T + b1)
    return h1 @ w2.T + b2


if __name__ == "__main__":
    key = jax.random.PRNGKey(0)
    key, kx = jax.random.split(key)
    w0, b0, w1, b1, w2, b2 = init_params(key)

    # Case 1: tiny batch -> single whole-array block, exact f32 path.
    x8 = jax.random.normal(kx, (8, 18), jnp.float32)
    ref8 = reference_forward(x8, w0, b0, w1, b1, w2, b2)
    out_f32 = jax.block_until_ready(
        gaussian_mlp_forward(x8, w0, b0, w1, b1, w2, b2, use_bf16=False))
    assert out_f32.shape == (8, 4)
    assert jnp.allclose(out_f32, ref8, atol=1e-5, rtol=1e-5)

    # Case 2: same batch via the default bf16-MXU fast path (error comes only
    # from rounding the operands to bf16; accumulation is f32).
    out_bf16 = jax.block_until_ready(
        gaussian_mlp_forward(x8, w0, b0, w1, b1, w2, b2, use_bf16=True))
    assert out_bf16.shape == (8, 4)
    assert jnp.allclose(out_bf16, ref8, atol=3e-2, rtol=3e-2)

    # Case 3: mid-size batch -> two 128-aligned lane blocks (grid=(2,)) with a
    # ragged last block, exercising the masked lane-tail path (f32, tight tol).
    key, kx2 = jax.random.split(key)
    x300 = jax.random.normal(kx2, (300, 18), jnp.float32)
    ref300 = reference_forward(x300, w0, b0, w1, b1, w2, b2)
    out300 = jax.block_until_ready(
        gaussian_mlp_forward(x300, w0, b0, w1, b1, w2, b2, use_bf16=False))
    assert out300.shape == (300, 4)
    assert jnp.allclose(out300, ref300, atol=1e-5, rtol=1e-5)

    # Case 4: explicitly small tile -> grid=(3,) multi-step bf16 path.
    out300b = jax.block_until_ready(
        gaussian_mlp_forward(x300, w0, b0, w1, b1, w2, b2,
                             batch_tile=128, use_bf16=True))
    assert out300b.shape == (300, 4)
    assert jnp.allclose(out300b, ref300, atol=3e-2, rtol=3e-2)

    print("KERNEL_OK")
</pallas_src>

<mosaic_0001>
module attributes {stable_mosaic.version = 11 : i64} {
  func.func @_mlp_kernel(%arg0: i32, %arg1: memref<18x8xf32, #tpu.memory_space<vmem>>, %arg2: memref<64x18xf32, #tpu.memory_space<vmem>>, %arg3: memref<64x1xf32, #tpu.memory_space<vmem>>, %arg4: memref<64x64xf32, #tpu.memory_space<vmem>>, %arg5: memref<64x1xf32, #tpu.memory_space<vmem>>, %arg6: memref<4x64xf32, #tpu.memory_space<vmem>>, %arg7: memref<4x1xf32, #tpu.memory_space<vmem>>, %arg8: memref<4x8xf32, #tpu.memory_space<vmem>>) attributes {dimension_semantics = [#tpu.dimension_semantics<parallel>], iteration_bounds = array<i64: 1>, scalar_prefetch = 0 : i64, scratch_operands = 0 : i64, tpu.core_type = #tpu.core_type<tc>, window_params = [{transform_indices = @transform_0, window_bounds = array<i64: 18, 8>}, {pipeline_mode = #tpu.pipeline_mode<synchronous>, transform_indices = @transform_1, window_bounds = array<i64: 64, 18>}, {pipeline_mode = #tpu.pipeline_mode<synchronous>, transform_indices = @transform_2, window_bounds = array<i64: 64, 1>}, {pipeline_mode = #tpu.pipeline_mode<synchronous>, transform_indices = @transform_3, window_bounds = array<i64: 64, 64>}, {pipeline_mode = #tpu.pipeline_mode<synchronous>, transform_indices = @transform_4, window_bounds = array<i64: 64, 1>}, {pipeline_mode = #tpu.pipeline_mode<synchronous>, transform_indices = @transform_5, window_bounds = array<i64: 4, 64>}, {pipeline_mode = #tpu.pipeline_mode<synchronous>, transform_indices = @transform_6, window_bounds = array<i64: 4, 1>}, {transform_indices = @transform_7, window_bounds = array<i64: 4, 8>}]} {
    %c0 = arith.constant 0 : index
    %c0_0 = arith.constant 0 : index
    %0 = vector.load %arg1[%c0, %c0_0] : memref<18x8xf32, #tpu.memory_space<vmem>>, vector<18x8xf32>
    %c0_1 = arith.constant 0 : index
    %c0_2 = arith.constant 0 : index
    %1 = vector.load %arg2[%c0_1, %c0_2] : memref<64x18xf32, #tpu.memory_space<vmem>>, vector<64x18xf32>
    %cst = arith.constant dense<0.000000e+00> : vector<64x8xf32>
    %2 = tpu.matmul %1, %0, %cst {dimension_numbers = #tpu.dot_dimension_numbers<[1], [0], [0], [1], [0, 0, 1, 1], [], []>} : vector<64x18xf32>, vector<18x8xf32>, vector<64x8xf32> -> vector<64x8xf32>
    %c0_3 = arith.constant 0 : index
    %c0_4 = arith.constant 0 : index
    %3 = vector.load %arg3[%c0_3, %c0_4] : memref<64x1xf32, #tpu.memory_space<vmem>>, vector<64x1xf32>
    %4 = vector.broadcast %3 : vector<64x1xf32> to vector<64x8xf32>
    %5 = arith.addf %2, %4 : vector<64x8xf32>
    %6 = math.tanh %5 : vector<64x8xf32>
    %c0_5 = arith.constant 0 : index
    %c0_6 = arith.constant 0 : index
    %7 = vector.load %arg4[%c0_5, %c0_6] : memref<64x64xf32, #tpu.memory_space<vmem>>, vector<64x64xf32>
    %cst_7 = arith.constant dense<0.000000e+00> : vector<64x8xf32>
    %8 = tpu.matmul %7, %6, %cst_7 {dimension_numbers = #tpu.dot_dimension_numbers<[1], [0], [0], [1], [0, 0, 1, 1], [], []>} : vector<64x64xf32>, vector<64x8xf32>, vector<64x8xf32> -> vector<64x8xf32>
    %c0_8 = arith.constant 0 : index
    %c0_9 = arith.constant 0 : index
    %9 = vector.load %arg5[%c0_8, %c0_9] : memref<64x1xf32, #tpu.memory_space<vmem>>, vector<64x1xf32>
    %10 = vector.broadcast %9 : vector<64x1xf32> to vector<64x8xf32>
    %11 = arith.addf %8, %10 : vector<64x8xf32>
    %12 = math.tanh %11 : vector<64x8xf32>
    %c0_10 = arith.constant 0 : index
    %c0_11 = arith.constant 0 : index
    %13 = vector.load %arg6[%c0_10, %c0_11] : memref<4x64xf32, #tpu.memory_space<vmem>>, vector<4x64xf32>
    %cst_12 = arith.constant dense<0.000000e+00> : vector<4x8xf32>
    %14 = tpu.matmul %13, %12, %cst_12 {dimension_numbers = #tpu.dot_dimension_numbers<[1], [0], [0], [1], [0, 0, 1, 1], [], []>} : vector<4x64xf32>, vector<64x8xf32>, vector<4x8xf32> -> vector<4x8xf32>
    %c0_13 = arith.constant 0 : index
    %c0_14 = arith.constant 0 : index
    %15 = vector.load %arg7[%c0_13, %c0_14] : memref<4x1xf32, #tpu.memory_space<vmem>>, vector<4x1xf32>
    %16 = vector.broadcast %15 : vector<4x1xf32> to vector<4x8xf32>
    %17 = arith.addf %14, %16 : vector<4x8xf32>
    %c0_15 = arith.constant 0 : index
    %c0_16 = arith.constant 0 : index
    %18 = vector.load %arg8[%c0_15, %c0_16] : memref<4x8xf32, #tpu.memory_space<vmem>>, vector<4x8xf32>
    tpu.vector_store %arg8[%c0_15, %c0_16], %17 {strides = array<i32>} : memref<4x8xf32, #tpu.memory_space<vmem>>, vector<4x8xf32>,
    return
  }
  func.func @transform_0(%arg0: i32) -> (i32, i32) {
    %c0_i32 = arith.constant 0 : i32
    %c0_i32_0 = arith.constant 0 : i32
    return %c0_i32, %arg0 : i32, i32
  }
  func.func @transform_1(%arg0: i32) -> (i32, i32) {
    %c0_i32 = arith.constant 0 : i32
    %c0_i32_0 = arith.constant 0 : i32
    %c0_i32_1 = arith.constant 0 : i32
    return %c0_i32, %c0_i32_0 : i32, i32
  }
  func.func @transform_2(%arg0: i32) -> (i32, i32) {
    %c0_i32 = arith.constant 0 : i32
    %c0_i32_0 = arith.constant 0 : i32
    %c0_i32_1 = arith.constant 0 : i32
    return %c0_i32, %c0_i32_0 : i32, i32
  }
  func.func @transform_3(%arg0: i32) -> (i32, i32) {
    %c0_i32 = arith.constant 0 : i32
    %c0_i32_0 = arith.constant 0 : i32
    %c0_i32_1 = arith.constant 0 : i32
    return %c0_i32, %c0_i32_0 : i32, i32
  }
  func.func @transform_4(%arg0: i32) -> (i32, i32) {
    %c0_i32 = arith.constant 0 : i32
    %c0_i32_0 = arith.constant 0 : i32
    %c0_i32_1 = arith.constant 0 : i32
    return %c0_i32, %c0_i32_0 : i32, i32
  }
  func.func @transform_5(%arg0: i32) -> (i32, i32) {
    %c0_i32 = arith.constant 0 : i32
    %c0_i32_0 = arith.constant 0 : i32
    %c0_i32_1 = arith.constant 0 : i32
    return %c0_i32, %c0_i32_0 : i32, i32
  }
  func.func @transform_6(%arg0: i32) -> (i32, i32) {
    %c0_i32 = arith.constant 0 : i32
    %c0_i32_0 = arith.constant 0 : i32
    %c0_i32_1 = arith.constant 0 : i32
    return %c0_i32, %c0_i32_0 : i32, i32
  }
  func.func @transform_7(%arg0: i32) -> (i32, i32) {
    %c0_i32 = arith.constant 0 : i32
    %c0_i32_0 = arith.constant 0 : i32
    return %c0_i32, %arg0 : i32, i32
  }
}

</mosaic_0001>

<bundles_post_ra>
// kernel: gaussian_mlp_forward.1
= control target key start
LH: loop header
LB: loop body
LE: loop exit
PB: predicated region body
PF: predicated region fallthrough
CT: control target
= control target key end

     0   :  { %vm111_vm0 = vcmask 1041408   ;;  %vm86_vm1 = vcmask 146432   ;;  %v697_v4 = vmov 0   ;;  %s872_s0 = inlined_call_operand.vmem [shape: f32[18,8], index: 0, kind: input, shape index: {}]   ;;  %s873_s1 = inlined_call_operand.vmem [shape: f32[64,18], index: 1, kind: input, shape index: {}]   ;;  %s874_s2 = inlined_call_operand.vmem [shape: f32[64,1], index: 2, kind: input, shape index: {}]   ;;  %s875_s3 = inlined_call_operand.vmem [shape: f32[64,64], index: 3, kind: input, shape index: {}]   ;;  %s876_s4 = inlined_call_operand.vmem [shape: f32[64,1], index: 4, kind: input, shape index: {}]   ;;  %s877_s5 = inlined_call_operand.vmem [shape: f32[4,64], index: 5, kind: input, shape index: {}]   ;;  %s878_s6 = inlined_call_operand.vmem [shape: f32[4,1], index: 6, kind: input, shape index: {}]   ;;  %s879_s7 = inlined_call_operand.hbm [shape: f32[4,8], index: 7, kind: output, shape index: {}]  }
   0x1   :  { %v29_v0 = vld [vmem:[%s872_s0 + $0x10] sm:$0x3]  ;;  %v28_v1 = vld [vmem:[%s872_s0 + $0x8] sm:$0xff]  ;;  %v30_v2 = vld [vmem:[%s873_s1] sm:$0xff]  ;;  %641 = vset.pattern.permute.xlu0 %v697_v4  ;;  %642 = vset.pattern.permute.xlu1 %v697_v4 }
   0x2   :  { %572 = vmatprep.subr.msk.mxu0 %vm111_vm0, %v29_v0  ;;  %v27_v3 = vld [vmem:[%s872_s0] sm:$0xff]  ;;  %578 = vmatprep.mubr.msk.f32.mxu0 %vm86_vm1, %v30_v2  ;;  %v45_v5 = vld [vmem:[%s874_s2 + $0x38] sm:$0xff]  ;;  %v31_v6 = vld [vmem:[%s873_s1 + $0x8] sm:$0xff] }
   0x3   :  { %573 = vmatpush3.msk.msra.mxu0 %vm111_vm0, %v29_v0  ;;  %83 = vperm.xlu0 %641, %v45_v5   ;;  %v43_v7 = vld [vmem:[%s874_s2 + $0x28] sm:$0xff]  ;;  %v32_v8 = vld [vmem:[%s873_s1 + $0x10] sm:$0xff]  ;;  %v42_v10 = vld [vmem:[%s874_s2 + $0x20] sm:$0xff] }
   0x4   :  { %574 = vmatprep.subr.mxu0 %v28_v1  ;;  %v44_v9 = vld [vmem:[%s874_s2 + $0x30] sm:$0xff]  ;;  %73 = vperm.xlu1 %642, %v43_v7   ;;  %v33_v11 = vld [vmem:[%s873_s1 + $0x18] sm:$0xff]  ;;  %v34_v12 = vld [vmem:[%s873_s1 + $0x20] sm:$0xff] }
   0x5   :  { %575 = vmatpush3.msra.mxu0 %v28_v1  ;;  %v41_v13 = vld [vmem:[%s874_s2 + $0x18] sm:$0xff] }
   0x6   :  { %576 = vmatprep.subr.mxu0 %v27_v3 }
   0x7   :  { %577 = vmatpush3.msra.mxu0 %v27_v3  ;;  %78 = vperm.xlu0 %641, %v44_v9  }
   0x8   :  { %579 = vmatmul.mubr.msk.f32.vlgmr.msra.gmra.mxu0 %vm86_vm1, %v31_v6 }
   0x9   :  { %581 = vmatprep.mubr.msk.f32.mxu0 %vm86_vm1, %v32_v8 }
   0xa   :  { %12 = vsyncpa [#allocation3], 0  ;;  %68 = vperm.xlu1 %642, %v42_v10   ;;  %v40_v14 = vld [vmem:[%s874_s2 + $0x10] sm:$0xff]  ;;  %v35_v15 = vld [vmem:[%s873_s1 + $0x28] sm:$0xff]  ;;  %vm284_vm2 = vcmask 523264   ;;  %v698_v5 = vmov 0.0  }
   0xb   :  { %63 = vperm.xlu0 %641, %v41_v13   ;;  %v36_v16 = vld [vmem:[%s873_s1 + $0x30] sm:$0xff]  ;;  %v39_v17 = vld [vmem:[%s874_s2 + $0x8] sm:$0xff]  ;;  %v38_v18 = vld [vmem:[%s874_s2] sm:$0xff]  ;;  %618 = vmatprep.subr.mxu0 %v698_v5  ;;  %vm699_vm3 = vmmov 0   ;;  %vm502_vm4 = vcmask 60416  }
   0xc   :  { %582 = vmatmul.mubr.msk.f32.gmra.mxu0 %vm86_vm1, %v33_v11  ;;  %v37_v19 = vld [vmem:[%s873_s1 + $0x38] sm:$0xff]  ;;  %v242_v21 = vld [vmem:[%s876_s4 + $0x30] sm:$0xff]  ;;  %v241_v22 = vld [vmem:[%s876_s4 + $0x28] sm:$0xff]  ;;  %s700_s1 = smov [#allocation2]  }
   0xd   :  { %584 = vmatprep.mubr.msk.f32.mxu0 %vm86_vm1, %v34_v12  ;;  %v243_v20 = vld [vmem:[%s876_s4 + $0x38] sm:$0xff]  ;;  %v240_v23 = vld [vmem:[%s876_s4 + $0x20] sm:$0xff]  ;;  %v238_v25 = vld [vmem:[%s876_s4 + $0x10] sm:$0xff]  ;;  %s510_s20 = sshll.u32 %s700_s1, 4  ;;  %s511_s20 = int_to_ptr.vmem [resolvable:$true] %s510_s20 }
   0xe   :  { %58 = vperm.xlu1 %642, %v40_v14   ;;  %v239_v24 = vld [vmem:[%s876_s4 + $0x18] sm:$0xff]  ;;  %v237_v26 = vld [vmem:[%s876_s4 + $0x8] sm:$0xff]  ;;  %v236_v27 = vld [vmem:[%s876_s4] sm:$0xff]  ;;  %s675_s21 = scalar_lea.vmem %s511_s20, 64  ;;  %p680_p1 = scmp.lt.s32.totalorder %s511_s20, %s511_s20 }
   0xf   :  { %53 = vperm.xlu0 %641, %v39_v17   ;;  %v423_v28 = vld [vmem:[%s878_s6] sm:$0xf]  ;;  %v229_v62 = vld [vmem:[%s875_s3 + $0x8] sm:$0xff]  ;;  %v230_v63 = vld [vmem:[%s875_s3 + $0x10] sm:$0xff]  ;;  %p676_p0 = scmp.ne.s32.totalorder %s511_s20, %s675_s21  ;;  %p681_p2 = scmp.lt.s32.totalorder %s675_s21, %s675_s21 }
  0x10   :  { %585 = vmatmul.mubr.msk.f32.gmra.mxu0 %vm86_vm1, %v35_v15  ;;  %v228_v29 = vld [vmem:[%s875_s3] sm:$0xff]  ;;  %v231_v0 = vld [vmem:[%s875_s3 + $0x18] sm:$0xff]  ;;  %v233_v2 = vld [vmem:[%s875_s3 + $0x28] sm:$0xff] }
  0x11   :  { %587 = vmatprep.mubr.msk.f32.mxu0 %vm86_vm1, %v36_v16  ;;  %606 = vmatprep.mubr.msk.f32.mxu1 %vm284_vm2, %v228_v29  ;;  %v232_v1 = vld [vmem:[%s875_s3 + $0x20] sm:$0xff]  ;;  %v234_v3 = vld [vmem:[%s875_s3 + $0x30] sm:$0xff]  ;;  %v235_v4 = vld [vmem:[%s875_s3 + $0x38] sm:$0xff]  ;;  %p682_p3 = por %p681_p2, %p680_p1 }
  0x12   :  { %48 = vperm.xlu1 %642, %v38_v18  }
  0x13   :  { %281 = vperm.xlu0 %641, %v243_v20   ;;  %p683_p4 = pnand %p682_p3, %p676_p0 }
  0x14   :  { %588 = vmatmul.mubr.msk.f32.gmra.mxu0 %vm86_vm1, %v37_v19 }
  0x15   :  { %634 = vmatprep.mubr.msk.f32.mxu0 %vm699_vm3, %v698_v5 }
  0x16   :  { %276 = vperm.xlu1 %642, %v242_v21  }
  0x17   :  { %271 = vperm.xlu0 %641, %v241_v22  }
  0x1a   :  { %266 = vperm.xlu1 %642, %v240_v23  }
  0x1b   :  { %261 = vperm.xlu0 %641, %v239_v24  }
  0x1e   :  { %256 = vperm.xlu1 %642, %v238_v25  }
  0x1f   :  { %251 = vperm.xlu0 %641, %v237_v26  }
  0x22   :  { %246 = vperm.xlu1 %642, %v236_v27  }
  0x23   :  { %426 = vperm.xlu0 %641, %v423_v28  }
  0x7e   :  { %v84_v32 = vpop.permute.xlu0 %83 }
  0x7f   :  { %v74_v34 = vpop.permute.xlu1 %73 }
  0x82   :  { %v79_v37 = vpop.permute.xlu0 %78 }
  0x85   :  { %v69_v39 = vpop.permute.xlu1 %68 }
  0x86   :  { %v64_v45 = vpop.permute.xlu0 %63 }
  0x89   :  { %v59_v47 = vpop.permute.xlu1 %58 }
  0x8a   :  { %v54_v50 = vpop.permute.xlu0 %53 }
  0x8d   :  { %v49_v52 = vpop.permute.xlu1 %48 }
  0x8e   :  { %v282_v8 = vpop.permute.xlu0 %281 }
  0x91   :  { %v277_v10 = vpop.permute.xlu1 %276 }
  0x92   :  { %v272_v13 = vpop.permute.xlu0 %271 }
  0x95   :  { %v267_v15 = vpop.permute.xlu1 %266 }
  0x96   :  { %v262_v21 = vpop.permute.xlu0 %261 }
  0x99   :  { %v257_v23 = vpop.permute.xlu1 %256 }
  0x9a   :  { %v252_v26 = vpop.permute.xlu0 %251 }
  0x9d   :  { %v247_v28 = vpop.permute.xlu1 %246 }
  0xc8   :  { %v580_v30 = vpop.f32.mrf.mxu0 }
  0xc9   :  { %v187_v51 = vadd.f32 %v580_v30, %v54_v50 }
  0xca   :  { %v181_v31 = vpop.f32.mrf.mxu0 }
  0xcb   :  { %v182_v53 = vadd.f32 %v181_v31, %v49_v52 }
  0xcc   :  { %v583_v33 = vpop.f32.mrf.mxu0 }
  0xcd   :  { %v197_v48 = vadd.f32 %v583_v33, %v64_v45 }
  0xce   :  { %v191_v35 = vpop.f32.mrf.mxu0 }
  0xcf   :  { %v192_v49 = vadd.f32 %v191_v35, %v59_v47 }
  0xd0   :  { %v586_v36 = vpop.f32.mrf.mxu0 }
  0xd1   :  { %v207_v43 = vadd.f32 %v586_v36, %v74_v34 }
  0xd2   :  { %v201_v38 = vpop.f32.mrf.mxu0 }
  0xd3   :  { %v202_v46 = vadd.f32 %v201_v38, %v69_v39  ;;  %v427_v39 = vpop.permute.xlu0 %426 }
  0xd4   :  { %v589_v40 = vpop.f32.mrf.mxu0 }
  0xd5   :  { %v217_v41 = vadd.f32 %v589_v40, %v84_v32 }
  0xd6   :  { %v211_v42 = vpop.f32.mrf.mxu0 }
  0xd7   :  { %643 = vtanh.f32 %v217_v41  ;;  %v212_v44 = vadd.f32 %v211_v42, %v79_v37  ;;  %v422_v37 = vld [vmem:[%s877_s5] sm:$0xf] }
  0xd9   :  { %645 = vtanh.f32 %v212_v44 }
  0xda   :  { %647 = vtanh.f32 %v207_v43 }
  0xdb   :  { %649 = vtanh.f32 %v202_v46 }
  0xdc   :  { %651 = vtanh.f32 %v197_v48 }
  0xdd   :  { %653 = vtanh.f32 %v192_v49 }
  0xde   :  { %655 = vtanh.f32 %v187_v51 }
  0xdf   :  { %657 = vtanh.f32 %v182_v53 }
  0xe4   :  { %v644_v54 = vpop.eup %643 }
  0xe5   :  { %590 = vmatprep.subr.mxu1 %v644_v54 }
  0xe6   :  { %v646_v55 = vpop.eup %645  ;;  %591 = vmatpush3.msra.mxu1 %v644_v54 }
  0xe7   :  { %592 = vmatprep.subr.mxu1 %v646_v55  ;;  %v648_v56 = vpop.eup %647 }
  0xe8   :  { %593 = vmatpush3.msra.mxu1 %v646_v55  ;;  %v650_v57 = vpop.eup %649 }
  0xe9   :  { %594 = vmatprep.subr.mxu1 %v648_v56  ;;  %v652_v58 = vpop.eup %651 }
  0xea   :  { %595 = vmatpush3.msra.mxu1 %v648_v56  ;;  %v654_v59 = vpop.eup %653 }
  0xeb   :  { %596 = vmatprep.subr.mxu1 %v650_v57  ;;  %v656_v60 = vpop.eup %655 }
  0xec   :  { %597 = vmatpush3.msra.mxu1 %v650_v57  ;;  %v658_v61 = vpop.eup %657 }
  0xed   :  { %598 = vmatprep.subr.mxu1 %v652_v58 }
  0xee   :  { %599 = vmatpush3.msra.mxu1 %v652_v58 }
  0xef   :  { %600 = vmatprep.subr.mxu1 %v654_v59 }
  0xf0   :  { %601 = vmatpush3.msra.mxu1 %v654_v59 }
  0xf1   :  { %602 = vmatprep.subr.mxu1 %v656_v60 }
  0xf2   :  { %603 = vmatpush3.msra.mxu1 %v656_v60 }
  0xf3   :  { %604 = vmatprep.subr.mxu1 %v658_v61 }
  0xf4   :  { %605 = vmatpush3.msra.mxu1 %v658_v61 }
  0xf5   :  { %607 = vmatmul.mubr.msk.f32.vlgmr.msra.gmra.mxu1 %vm284_vm2, %v229_v62 }
  0xf6   :  { %609 = vmatprep.mubr.msk.f32.mxu1 %vm284_vm2, %v230_v63 }
  0xf9   :  { %610 = vmatmul.mubr.msk.f32.gmra.mxu1 %vm284_vm2, %v231_v0 }
  0xfa   :  { %612 = vmatprep.mubr.msk.f32.mxu1 %vm284_vm2, %v232_v1 }
  0xfd   :  { %613 = vmatmul.mubr.msk.f32.gmra.mxu1 %vm284_vm2, %v233_v2 }
  0xfe   :  { %615 = vmatprep.mubr.msk.f32.mxu1 %vm284_vm2, %v234_v3 }
 0x101   :  { %616 = vmatmul.mubr.msk.f32.gmra.mxu1 %vm284_vm2, %v235_v4 }
 0x1b5   :  { %v608_v6 = vpop.f32.mrf.mxu1 }
 0x1b6   :  { %v381_v27 = vadd.f32 %v608_v6, %v252_v26 }
 0x1b7   :  { %v375_v7 = vpop.f32.mrf.mxu1 }
 0x1b8   :  { %v376_v29 = vadd.f32 %v375_v7, %v247_v28 }
 0x1b9   :  { %v611_v9 = vpop.f32.mrf.mxu1 }
 0x1ba   :  { %v391_v24 = vadd.f32 %v611_v9, %v262_v21 }
 0x1bb   :  { %v385_v11 = vpop.f32.mrf.mxu1 }
 0x1bc   :  { %v386_v25 = vadd.f32 %v385_v11, %v257_v23 }
 0x1bd   :  { %v614_v12 = vpop.f32.mrf.mxu1 }
 0x1be   :  { %v401_v19 = vadd.f32 %v614_v12, %v272_v13 }
 0x1bf   :  { %v395_v14 = vpop.f32.mrf.mxu1 }
 0x1c0   :  { %v396_v22 = vadd.f32 %v395_v14, %v267_v15 }
 0x1c1   :  { %v617_v16 = vpop.f32.mrf.mxu1 }
 0x1c2   :  { %v411_v17 = vadd.f32 %v617_v16, %v282_v8 }
 0x1c3   :  { %v405_v18 = vpop.f32.mrf.mxu1 }
 0x1c4   :  { %659 = vtanh.f32 %v411_v17  ;;  %v406_v20 = vadd.f32 %v405_v18, %v277_v10 }
 0x1c6   :  { %661 = vtanh.f32 %v406_v20 }
 0x1c7   :  { %663 = vtanh.f32 %v401_v19 }
 0x1c8   :  { %665 = vtanh.f32 %v396_v22 }
 0x1c9   :  { %667 = vtanh.f32 %v391_v24 }
 0x1ca   :  { %669 = vtanh.f32 %v386_v25 }
 0x1cb   :  { %671 = vtanh.f32 %v381_v27 }
 0x1cc   :  { %673 = vtanh.f32 %v376_v29 }
 0x1d1   :  { %v660_v30 = vpop.eup %659 }
 0x1d2   :  { %619 = vmatpush3.msra.mxu0 %v660_v30 }
 0x1d3   :  { %v662_v31 = vpop.eup %661  ;;  %620 = vmatprep.subr.mxu0 %v698_v5 }
 0x1d4   :  { %621 = vmatpush3.msra.mxu0 %v662_v31  ;;  %v664_v32 = vpop.eup %663 }
 0x1d5   :  { %622 = vmatprep.subr.mxu0 %v698_v5  ;;  %v666_v33 = vpop.eup %665 }
 0x1d6   :  { %623 = vmatpush3.msra.mxu0 %v664_v32  ;;  %v668_v34 = vpop.eup %667 }
 0x1d7   :  { %624 = vmatprep.subr.mxu0 %v698_v5  ;;  %v670_v35 = vpop.eup %669 }
 0x1d8   :  { %625 = vmatpush3.msra.mxu0 %v666_v33  ;;  %v672_v36 = vpop.eup %671 }
 0x1d9   :  { %626 = vmatprep.subr.mxu0 %v698_v5  ;;  %v674_v38 = vpop.eup %673 }
 0x1da   :  { %627 = vmatpush3.msra.mxu0 %v668_v34 }
 0x1db   :  { %628 = vmatprep.subr.mxu0 %v698_v5 }
 0x1dc   :  { %629 = vmatpush3.msra.mxu0 %v670_v35 }
 0x1dd   :  { %630 = vmatprep.subr.mxu0 %v698_v5 }
 0x1de   :  { %631 = vmatpush3.msra.mxu0 %v672_v36 }
 0x1df   :  { %632 = vmatprep.subr.mxu0 %v698_v5 }
 0x1e0   :  { %633 = vmatpush3.msra.mxu0 %v674_v38 }
 0x1e1   :  { %635 = vmatmul.mubr.msk.f32.vlgmr.msra.gmra.mxu0 %vm284_vm2, %v422_v37 }
 0x2a1   :  { %v498_v40 = vpop.f32.mrf.mxu0 }
 0x2a2   :  { %v499_v41 = vadd.f32 %v498_v40, %v427_v39 }
 0x2a3   :  { %v636_v42 = vpop.f32.mrf.mxu0 }
 0x2a4   :  { %503 = vst.msk [vmem:[#allocation2] sm:$0xf] %vm502_vm4, %v499_v41 }
 0x2a5   :  { %686 = shalt.err (!%p683_p4)
}
 0x2a6   :  { %513 = dma.vmem_to_hbm [thread:$0]  %s511_s20, 64, %s879_s7, [#allocation3]  }
 0x2a7   :  { %695 = dma.done.wait [#allocation3], 64  }
 0x2a8   :  { %696 = vsyncadd [#allocation3], 4294967232 }
 0x2a9   :  { %517 = vsyncpa [#allocation3], 1 }

</bundles_post_ra>
